<compile_context>
chip_gen: v5e
topology: v5e:2x2
jax: 0.10.0
libtpu: 0.0.40
codegen_flags: <defaults>
</compile_context>

<pallas_src>
import jax
import jax.numpy as jnp
from jax.experimental import pallas as pl
from jax.experimental.pallas import tpu as pltpu


def _fused_gcn_residual_kernel(a_ref, x_ref, w_ref, b_ref, o_ref, xw_ref):
    # a_ref : (tm, Np)  row tile of this branch's dense adjacency
    # x_ref : (Np, Hp)  this branch's node features (resident across row tiles)
    # w_ref : (Hp, Hp)  GraphConv weight
    # b_ref : (1, Hp)   GraphConv bias
    # o_ref : (tm, Hp)  output row tile
    # xw_ref: (Np, Hp)  f32 VMEM scratch holding X @ W for the current branch
    row = pl.program_id(1)
    tm = o_ref.shape[0]

    # X @ W is independent of the A row tile: compute it once per branch.
    @pl.when(row == 0)
    def _():
        xw_ref[...] = jnp.dot(x_ref[...], w_ref[...],
                              preferred_element_type=jnp.float32)

    # Graph aggregation: A_tile @ (X W)   (norm='none' -> plain neighbor sum)
    axw = jnp.dot(a_ref[...], xw_ref[...], preferred_element_type=jnp.float32)
    # Bias AFTER aggregation (do NOT fold into X@W), ReLU, residual add.
    h = jnp.maximum(axw + b_ref[...], 0.0)
    start = pl.multiple_of(row * tm, tm)
    x_tile = x_ref[pl.ds(start, tm), :].astype(jnp.float32)
    o_ref[...] = (h + x_tile).astype(o_ref.dtype)


def _round_up(n, m):
    return ((n + m - 1) // m) * m


def _pad_axis(x, axis, new_size):
    pad = new_size - x.shape[axis]
    if pad == 0:
        return x
    widths = [(0, 0)] * x.ndim
    widths[axis] = (0, pad)
    return jnp.pad(x, widths)


def fused_gcn_residual(adj, x, w, b, *, row_tile=256):
    """relu(adj[g] @ x[g] @ w[g] + b[g]) + x[g] for every branch g, one kernel.

    adj: (G, N, N)  x: (G, N, H)  w: (G, H, H)  b: (G, H) or (G, 1, H)
    """
    g, n, h = x.shape
    assert adj.shape == (g, n, n)
    assert w.shape == (g, h, h)
    b = b.reshape(g, 1, h)

    # Lane-dense hidden dim (unmasked vector stores) and 8-aligned, tileable rows.
    hp = _round_up(h, 128)
    tm = min(row_tile, _round_up(n, 8))
    n_pad = _round_up(n, tm)

    adj_p = _pad_axis(_pad_axis(adj, 1, n_pad), 2, n_pad)
    x_p = _pad_axis(_pad_axis(x, 1, n_pad), 2, hp)
    w_p = _pad_axis(_pad_axis(w, 1, hp), 2, hp)
    b_p = _pad_axis(b, 2, hp)
    # TODO(synk): for large graphs on v6e/v7x, cast adj (0/1) and x to bf16
    # here to halve VMEM/HBM traffic; kept f32 to match the reference exactly.

    flops = 2 * g * (n_pad * hp * hp + n_pad * n_pad * hp)
    bytes_accessed = (sum(int(t.size) * t.dtype.itemsize
                          for t in (adj_p, x_p, w_p, b_p))
                      + g * n_pad * hp * x.dtype.itemsize)

    out = pl.pallas_call(
        _fused_gcn_residual_kernel,
        out_shape=jax.ShapeDtypeStruct((g, n_pad, hp), x.dtype),
        grid=(g, n_pad // tm),
        in_specs=[
            pl.BlockSpec((pl.Squeezed(), tm, n_pad), lambda gi, ri: (gi, ri, 0)),  # A tile
            pl.BlockSpec((pl.Squeezed(), n_pad, hp), lambda gi, ri: (gi, 0, 0)),   # X
            pl.BlockSpec((pl.Squeezed(), hp, hp), lambda gi, ri: (gi, 0, 0)),      # W
            pl.BlockSpec((pl.Squeezed(), 1, hp), lambda gi, ri: (gi, 0, 0)),       # b
        ],
        out_specs=pl.BlockSpec((pl.Squeezed(), tm, hp),
                               lambda gi, ri: (gi, ri, 0)),
        scratch_shapes=[pltpu.VMEM((n_pad, hp), jnp.float32)],
        compiler_params=pltpu.CompilerParams(
            # Branch axis is embarrassingly parallel (megacore win on v7x);
            # row axis stays "arbitrary" because the X@W scratch is filled at
            # row == 0 and reused by the later row tiles of the same branch.
            dimension_semantics=("parallel", "arbitrary")),
        cost_estimate=pl.CostEstimate(flops=flops, transcendentals=0,
                                      bytes_accessed=bytes_accessed),
    )(adj_p, x_p, w_p, b_p)

    return out[:, :n, :h]


@jax.jit
def go_sim_embedding(h_mf, h_bp, h_cc, mf_adj, bp_adj, cc_adj, params):
    """Forward pass of GO_sim_embedding (all three branches in one kernel).

    params: dict with keys 'mf', 'bp', 'cc', each a (W, b) tuple.
    Returns (mf_feat, bp_feat, cc_feat).
    """
    adj = jnp.stack([mf_adj, bp_adj, cc_adj])
    x = jnp.stack([h_mf, h_bp, h_cc])
    w = jnp.stack([params["mf"][0], params["bp"][0], params["cc"][0]])
    b = jnp.stack([params["mf"][1], params["bp"][1], params["cc"][1]])
    feats = fused_gcn_residual(adj, x, w, b)
    return feats[0], feats[1], feats[2]


def _reference(adj, x, w, b):
    return jnp.maximum(adj @ x @ w + b[None, :], 0.0) + x


if __name__ == "__main__":
    n_nodes = 8      # number of GO-term / protein nodes per graph (small)
    n_hidden = 32    # hidden feature size

    key = jax.random.PRNGKey(0)
    keys = jax.random.split(key, 12)

    # node features for MF / BP / CC branches
    h_mf = jax.random.normal(keys[0], (n_nodes, n_hidden), jnp.float32)
    h_bp = jax.random.normal(keys[1], (n_nodes, n_hidden), jnp.float32)
    h_cc = jax.random.normal(keys[2], (n_nodes, n_hidden), jnp.float32)

    # dense adjacency matrices of the similarity graphs (non-negative weights,
    # zero in-degree allowed -> no normalization, matches norm='none')
    mf_adj = (jax.random.uniform(keys[3], (n_nodes, n_nodes)) > 0.5).astype(jnp.float32)
    bp_adj = (jax.random.uniform(keys[4], (n_nodes, n_nodes)) > 0.5).astype(jnp.float32)
    cc_adj = (jax.random.uniform(keys[5], (n_nodes, n_nodes)) > 0.5).astype(jnp.float32)

    # deterministic GraphConv parameters (weight=True, bias present)
    scale = 1.0 / jnp.sqrt(jnp.float32(n_hidden))
    params = {
        "mf": (jax.random.normal(keys[6], (n_hidden, n_hidden)) * scale,
               jax.random.normal(keys[7], (n_hidden,)) * 0.1),
        "bp": (jax.random.normal(keys[8], (n_hidden, n_hidden)) * scale,
               jax.random.normal(keys[9], (n_hidden,)) * 0.1),
        "cc": (jax.random.normal(keys[10], (n_hidden, n_hidden)) * scale,
               jax.random.normal(keys[11], (n_hidden,)) * 0.1),
    }

    mf_feat, bp_feat, cc_feat = go_sim_embedding(
        h_mf, h_bp, h_cc, mf_adj, bp_adj, cc_adj, params)
    jax.block_until_ready((mf_feat, bp_feat, cc_feat))

    # correctness check against plain-JAX reference
    ref_mf = _reference(mf_adj, h_mf, *params["mf"])
    ref_bp = _reference(bp_adj, h_bp, *params["bp"])
    ref_cc = _reference(cc_adj, h_cc, *params["cc"])
    assert jnp.allclose(mf_feat, ref_mf, atol=1e-5, rtol=1e-5)
    assert jnp.allclose(bp_feat, ref_bp, atol=1e-5, rtol=1e-5)
    assert jnp.allclose(cc_feat, ref_cc, atol=1e-5, rtol=1e-5)

    print("KERNEL_OK")
</pallas_src>

<mosaic_0001>
module attributes {stable_mosaic.version = 11 : i64} {
  func.func @_fused_gcn_residual_kernel(%arg0: i32, %arg1: i32, %arg2: memref<1x8x8xf32, #tpu.memory_space<vmem>>, %arg3: memref<1x8x128xf32, #tpu.memory_space<vmem>>, %arg4: memref<1x128x128xf32, #tpu.memory_space<vmem>>, %arg5: memref<1x1x128xf32, #tpu.memory_space<vmem>>, %arg6: memref<1x8x128xf32, #tpu.memory_space<vmem>>, %arg7: memref<8x128xf32, #tpu.memory_space<vmem>>) attributes {dimension_semantics = [#tpu.dimension_semantics<parallel>, #tpu.dimension_semantics<arbitrary>], iteration_bounds = array<i64: 3, 1>, scalar_prefetch = 0 : i64, scratch_operands = 1 : i64, tpu.core_type = #tpu.core_type<tc>, window_params = [{transform_indices = @transform_0, window_bounds = array<i64: 1, 8, 8>}, {transform_indices = @transform_1, window_bounds = array<i64: 1, 8, 128>}, {transform_indices = @transform_2, window_bounds = array<i64: 1, 128, 128>}, {transform_indices = @transform_3, window_bounds = array<i64: 1, 1, 128>}, {transform_indices = @transform_4, window_bounds = array<i64: 1, 8, 128>}]} {
    %c0_i32 = arith.constant 0 : i32
    %0 = arith.cmpi eq, %arg1, %c0_i32 : i32
    %1 = arith.extui %0 : i1 to i32
    %c0_i32_0 = arith.constant 0 : i32
    %2 = arith.cmpi ne, %1, %c0_i32_0 : i32
    scf.if %2 {
      %c0_14 = arith.constant 0 : index
      %c0_15 = arith.constant 0 : index
      %c0_16 = arith.constant 0 : index
      %22 = vector.load %arg3[%c0_14, %c0_15, %c0_16] : memref<1x8x128xf32, #tpu.memory_space<vmem>>, vector<1x8x128xf32>
      %23 = vector.shape_cast %22 : vector<1x8x128xf32> to vector<8x128xf32>
      %c0_17 = arith.constant 0 : index
      %c0_18 = arith.constant 0 : index
      %c0_19 = arith.constant 0 : index
      %24 = vector.load %arg4[%c0_17, %c0_18, %c0_19] : memref<1x128x128xf32, #tpu.memory_space<vmem>>, vector<1x128x128xf32>
      %25 = vector.shape_cast %24 : vector<1x128x128xf32> to vector<128x128xf32>
      %cst_20 = arith.constant dense<0.000000e+00> : vector<8x128xf32>
      %26 = tpu.matmul %23, %25, %cst_20 {dimension_numbers = #tpu.dot_dimension_numbers<[1], [0], [0], [1], [0, 0, 1, 1], [], []>} : vector<8x128xf32>, vector<128x128xf32>, vector<8x128xf32> -> vector<8x128xf32>
      %c0_21 = arith.constant 0 : index
      %c0_22 = arith.constant 0 : index
      %27 = vector.load %arg7[%c0_21, %c0_22] : memref<8x128xf32, #tpu.memory_space<vmem>>, vector<8x128xf32>
      tpu.vector_store %arg7[%c0_21, %c0_22], %26 {strides = array<i32>} : memref<8x128xf32, #tpu.memory_space<vmem>>, vector<8x128xf32>,
    } else {
    }
    %c0 = arith.constant 0 : index
    %c0_1 = arith.constant 0 : index
    %c0_2 = arith.constant 0 : index
    %3 = vector.load %arg2[%c0, %c0_1, %c0_2] : memref<1x8x8xf32, #tpu.memory_space<vmem>>, vector<1x8x8xf32>
    %4 = vector.shape_cast %3 : vector<1x8x8xf32> to vector<8x8xf32>
    %c0_3 = arith.constant 0 : index
    %c0_4 = arith.constant 0 : index
    %5 = vector.load %arg7[%c0_3, %c0_4] : memref<8x128xf32, #tpu.memory_space<vmem>>, vector<8x128xf32>
    %cst = arith.constant dense<0.000000e+00> : vector<8x128xf32>
    %6 = tpu.matmul %4, %5, %cst {dimension_numbers = #tpu.dot_dimension_numbers<[1], [0], [0], [1], [0, 0, 1, 1], [], []>} : vector<8x8xf32>, vector<8x128xf32>, vector<8x128xf32> -> vector<8x128xf32>
    %c0_5 = arith.constant 0 : index
    %c0_6 = arith.constant 0 : index
    %c0_7 = arith.constant 0 : index
    %7 = vector.load %arg5[%c0_5, %c0_6, %c0_7] : memref<1x1x128xf32, #tpu.memory_space<vmem>>, vector<1x1x128xf32>
    %8 = vector.shape_cast %7 : vector<1x1x128xf32> to vector<1x128xf32>
    %9 = vector.broadcast %8 : vector<1x128xf32> to vector<8x128xf32>
    %10 = arith.addf %6, %9 : vector<8x128xf32>
    %cst_8 = arith.constant 0.000000e+00 : f32
    %11 = vector.broadcast %cst_8 : f32 to vector<8x128xf32>
    %12 = arith.maximumf %10, %11 : vector<8x128xf32>
    %c8_i32 = arith.constant 8 : i32
    %13 = arith.muli %arg1, %c8_i32 : i32
    %14 = tpu.assume_multiple %13, 8 : i32
    %c0_9 = arith.constant 0 : index
    %15 = arith.index_cast %14 : i32 to index
    %c0_10 = arith.constant 0 : index
    %16 = vector.load %arg3[%c0_9, %15, %c0_10] : memref<1x8x128xf32, #tpu.memory_space<vmem>>, vector<1x8x128xf32>
    %17 = vector.shape_cast %16 : vector<1x8x128xf32> to vector<8x128xf32>
    %18 = arith.addf %12, %17 : vector<8x128xf32>
    %c0_11 = arith.constant 0 : index
    %c0_12 = arith.constant 0 : index
    %c0_13 = arith.constant 0 : index
    %19 = vector.load %arg6[%c0_11, %c0_12, %c0_13] : memref<1x8x128xf32, #tpu.memory_space<vmem>>, vector<1x8x128xf32>
    %20 = vector.shape_cast %19 : vector<1x8x128xf32> to vector<8x128xf32>
    %21 = vector.shape_cast %18 : vector<8x128xf32> to vector<1x8x128xf32>
    tpu.vector_store %arg6[%c0_11, %c0_12, %c0_13], %21 {strides = array<i32>} : memref<1x8x128xf32, #tpu.memory_space<vmem>>, vector<1x8x128xf32>,
    return
  }
  func.func @transform_0(%arg0: i32, %arg1: i32) -> (i32, i32, i32) {
    %c0_i32 = arith.constant 0 : i32
    %c0_i32_0 = arith.constant 0 : i32
    return %arg0, %arg1, %c0_i32 : i32, i32, i32
  }
  func.func @transform_1(%arg0: i32, %arg1: i32) -> (i32, i32, i32) {
    %c0_i32 = arith.constant 0 : i32
    %c0_i32_0 = arith.constant 0 : i32
    %c0_i32_1 = arith.constant 0 : i32
    return %arg0, %c0_i32, %c0_i32_0 : i32, i32, i32
  }
  func.func @transform_2(%arg0: i32, %arg1: i32) -> (i32, i32, i32) {
    %c0_i32 = arith.constant 0 : i32
    %c0_i32_0 = arith.constant 0 : i32
    %c0_i32_1 = arith.constant 0 : i32
    return %arg0, %c0_i32, %c0_i32_0 : i32, i32, i32
  }
  func.func @transform_3(%arg0: i32, %arg1: i32) -> (i32, i32, i32) {
    %c0_i32 = arith.constant 0 : i32
    %c0_i32_0 = arith.constant 0 : i32
    %c0_i32_1 = arith.constant 0 : i32
    return %arg0, %c0_i32, %c0_i32_0 : i32, i32, i32
  }
  func.func @transform_4(%arg0: i32, %arg1: i32) -> (i32, i32, i32) {
    %c0_i32 = arith.constant 0 : i32
    %c0_i32_0 = arith.constant 0 : i32
    return %arg0, %arg1, %c0_i32 : i32, i32, i32
  }
}

</mosaic_0001>

<bundles_post_ra>
// kernel: go_sim_embedding.1
= control target key start
LH: loop header
LB: loop body
LE: loop exit
PB: predicated region body
PF: predicated region fallthrough
CT: control target
= control target key end

     0   :  { %s550_s15 = smov 0   ;;  %s552_s16 = smov 0   ;;  %s615_s0 = inlined_call_operand.vmem [shape: f32[3,8,8], index: 0, kind: input, shape index: {}]   ;;  %s616_s1 = inlined_call_operand.vmem [shape: f32[3,8,128], index: 1, kind: input, shape index: {}]   ;;  %s617_s2 = inlined_call_operand.vmem [shape: f32[3,128,128], index: 2, kind: input, shape index: {}]   ;;  %s618_s3 = inlined_call_operand.vmem [shape: f32[3,1,128], index: 3, kind: input, shape index: {}]   ;;  %s619_s4 = inlined_call_operand.vmem [shape: f32[3,8,128], index: 4, kind: output, shape index: {}]  }
   0x1   :  { %s554_s17 = smov 0  }
   0x2 LB: > { %s26_s18 = sadd.s32 1, %s519_s16  ;;  %p466_p0 = scmp.ge.s32.totalorder %s523_s17, 1  ;;  %s523_s17 = sphi %s554_s17, %s14_s17   ;;  %s519_s16 = sphi %s552_s16, %s621_s16   ;;  %s515_s15 = sphi %s550_s15, %s620_s15  }
   0x3   : > { %p28_p1 = scmp.ge.s32.totalorder %s26_s18, 3  ;;  %p207_p2 = scmp.lt.s32.totalorder %s523_s17, 4 }
   0x5   : > { %s623_s18 = smov (%p28_p1, %s26_s18), 0  ;;  %p208_p3 = pnand %p466_p0, %p207_p2 }
   0x6   : > { %p249_p4 = scmp.lt.s32.totalorder (!%p208_p3), %s515_s15, 2 }
   0x7   : > { %211 = sbr.rel (%p208_p3) target bundleno = 307 (0x133), region = 36 }
   0xc   : > { %s625_s15 = smov (!%p249_p4, %s515_s15), 2  ;;  %vm323_vm0 = vcmask 64512  }
   0xd   : > { %s475_s19 = sshll.u32 %s625_s15, 7  ;;  %s467_s23 = sshll.u32 %s625_s15, 3 }
   0xe   : > { %s574_s22 = scalar_lea.vmem %s617_s2, %s475_s19  ;;  %s259_s26 = scalar_lea.vmem %s616_s1, %s467_s23 }
   0xf   : > { %v295_v0 = vld [vmem:[%s574_s22 + $0x78] sm:$0xff]  ;;  %v294_v1 = vld [vmem:[%s574_s22 + $0x70] sm:$0xff]  ;;  %v293_v2 = vld [vmem:[%s574_s22 + $0x68] sm:$0xff]  ;;  %s267_s29 = scalar_lea.vmem %s618_s3, %s625_s15  ;;  %s255_s6 = scalar_lea.vmem %s615_s0, %s467_s23 }
  0x10   : > { %296 = vmatpush.msra.mxu0 %v295_v0  ;;  %v292_v3 = vld [vmem:[%s574_s22 + $0x60] sm:$0xff]  ;;  %v291_v4 = vld [vmem:[%s574_s22 + $0x58] sm:$0xff]  ;;  %v290_v5 = vld [vmem:[%s574_s22 + $0x50] sm:$0xff]  ;;  %s274_s9 = scalar_lea.vmem %s619_s4, %s467_s23 }
  0x11   : > { %v289_v6 = vld [vmem:[%s574_s22 + $0x48] sm:$0xff]  ;;  %v288_v7 = vld [vmem:[%s574_s22 + $0x40] sm:$0xff]  ;;  %v287_v8 = vld [vmem:[%s574_s22 + $0x38] sm:$0xff] }
  0x12   : > { %297 = vmatpush.msra.mxu0 %v294_v1  ;;  %v286_v9 = vld [vmem:[%s574_s22 + $0x30] sm:$0xff]  ;;  %v285_v10 = vld [vmem:[%s574_s22 + $0x28] sm:$0xff]  ;;  %v284_v11 = vld [vmem:[%s574_s22 + $0x20] sm:$0xff] }
  0x13   : > { %v283_v12 = vld [vmem:[%s574_s22 + $0x18] sm:$0xff]  ;;  %v282_v13 = vld [vmem:[%s574_s22 + $0x10] sm:$0xff]  ;;  %v281_v14 = vld [vmem:[%s574_s22 + $0x8] sm:$0xff] }
  0x14   : > { %298 = vmatpush.msra.mxu0 %v293_v2  ;;  %v280_v15 = vld [vmem:[%s574_s22] sm:$0xff] }
  0x15   : > { %v279_v16 = vld [vmem:[%s259_s26] sm:$0xff] }
  0x16   : > { %299 = vmatpush.msra.mxu0 %v292_v3  ;;  %v317_v17 = vld [vmem:[%s255_s6] sm:$0xff] }
  0x17   : > { %v500_v19 = vld [vmem:[%s267_s29] ss:$0 sm:$0xff] }
  0x18   : > { %300 = vmatpush.msra.mxu0 %v291_v4 }
  0x1a   : > { %301 = vmatpush.msra.mxu0 %v290_v5 }
  0x1c   : > { %302 = vmatpush.msra.mxu0 %v289_v6 }
  0x1e   : > { %303 = vmatpush.msra.mxu0 %v288_v7 }
  0x20   : > { %304 = vmatpush.msra.mxu0 %v287_v8 }
  0x22   : > { %305 = vmatpush.msra.mxu0 %v286_v9 }
  0x24   : > { %306 = vmatpush.msra.mxu0 %v285_v10 }
  0x26   : > { %307 = vmatpush.msra.mxu0 %v284_v11 }
  0x28   : > { %308 = vmatpush.msra.mxu0 %v283_v12 }
  0x2a   : > { %309 = vmatpush.msra.mxu0 %v282_v13 }
  0x2c   : > { %310 = vmatpush.msra.mxu0 %v281_v14 }
  0x2e   : > { %311 = vmatpush.msra.mxu0 %v280_v15 }
  0x2f   : > { %312 = vmatmul.f32.vlgmr.msra.gmra.mxu0 %v279_v16 }
  0xac   : > { %v313_v18 = vpop.f32.mrf.mxu0 }
  0xad   : > { %342 = vmatpush.msra.mxu1 %v313_v18 }
  0xae   : > { %472 = vmatmul.msk.f32.vlgmr.msra.gmra.mxu1 %vm323_vm0, %v317_v17 }
 0x12b   : > { %v344_v20 = vpop.f32.mrf.mxu1 }
 0x12c   : > { %v345_v21 = vadd.f32 %v500_v19, %v344_v20 }
 0x12e   : > { %v347_v22 = vmax.f32 %v345_v21, 0.0 }
 0x130   : > { %v351_v23 = vadd.f32 %v347_v22, %v279_v16 }
 0x132   : > { %352 = vst [vmem:[%s274_s9] sm:$0xff] %v351_v23 }
 0x133 PF: > { %s14_s17 = sadd.s32 1, %s523_s17   ;;  %s620_s15 = smov %s519_s16 }
 0x134   : > { %p11_p5 = scmp.ge.s32.totalorder %s14_s17, 5   ;;  %s621_s16 = smov %s623_s18 }
 0x136   :  { %13 = sbr.rel (!%p11_p5) target bundleno = 2 (0x2), region = 80 }

</bundles_post_ra>
